<compile_context>
chip_gen: v7x
topology: tpu7x:2x2x1
jax: 0.10.0
libtpu: 0.0.40
codegen_flags: <defaults>
</compile_context>

<pallas_src>
import functools

import jax
import jax.numpy as jnp
import numpy as np
from jax.experimental import pallas as pl
from jax.experimental.pallas import tpu as pltpu

EPS = 1e-5


def _basic_block_kernel(x_ref, a1_ref, g1_ref, b1_ref, a2_ref, g2_ref,
                        b2_ref, s_ref, out_ref, *, h):
    # x_ref   : (N*H, W*C)     lane-dense activations (f32)
    # a*_ref  : (3, W*C, W*C)  block-banded conv weights (one band per dy tap)
    # g*,b*   : (1, W*C)       BN gamma / beta tiled over W (lane-dense)
    # s_ref   : (W*C, W*C)     channel-sum matrix prescaled by 1/(N*H*W):
    #                          S[i, j] = (i % C == j % C) / (N*H*W)
    # out_ref : (N*H, W*C)
    nh, wc = x_ref.shape

    x = x_ref[...]                            # ~4 vregs at (32, 128) f32

    # Row-validity masks for the +-1 vertical shifts (= vertical zero padding,
    # also stops rows leaking across image boundaries inside the N*H axis).
    # Computed once, reused by both convs.
    h_idx = jax.lax.broadcasted_iota(jnp.int32, (nh, wc), 0) % h
    has_above = h_idx > 0
    has_below = h_idx < (h - 1)
    zrow = jnp.zeros((1, wc), jnp.float32)

    def conv3x3(v, a_ref):
        up = jnp.where(has_above,
                       jnp.concatenate([zrow, v[:-1, :]], axis=0), 0.0)  # v[r-1]
        dn = jnp.where(has_below,
                       jnp.concatenate([v[1:, :], zrow], axis=0), 0.0)   # v[r+1]
        acc = jnp.dot(up, a_ref[0], preferred_element_type=jnp.float32)
        acc = acc + jnp.dot(v, a_ref[1], preferred_element_type=jnp.float32)
        acc = acc + jnp.dot(dn, a_ref[2], preferred_element_type=jnp.float32)
        return acc

    def batchnorm(v, g_ref, b_ref):
        # Single pass: per-lane sum / sum-of-squares (XLU), then ONE matmul of
        # the stacked (2, WC) stats against the prescaled channel-sum matrix.
        # This folds the W lane-groups of each channel together, divides by
        # the element count, AND broadcasts back across the lane axis in one
        # MXU op (stays lane-dense, no reshapes).
        rowsum = jnp.sum(v, axis=0, keepdims=True)                     # (1, WC)
        rowsq = jnp.sum(v * v, axis=0, keepdims=True)                  # (1, WC)
        stats = jnp.dot(jnp.concatenate([rowsum, rowsq], axis=0),
                        s_ref[...], preferred_element_type=jnp.float32)  # (2, WC)
        mean = stats[0:1, :]
        var = stats[1:2, :] - mean * mean                              # biased
        inv_std = jax.lax.rsqrt(var + EPS)
        return (v - mean) * (inv_std * g_ref[...]) + b_ref[...]

    # conv1 -> bn1 -> relu
    y = jnp.maximum(batchnorm(conv3x3(x, a1_ref), g1_ref, b1_ref), 0.0)
    # conv2 -> bn2 -> (+ identity) -> relu, fused into the single output store
    z = batchnorm(conv3x3(y, a2_ref), g2_ref, b2_ref)
    out_ref[...] = jnp.maximum(z + x, 0.0).astype(out_ref.dtype)


@jax.jit
def basic_block_forward(x_nchw, w1, g1, b1, w2, g2, b2):
    """BasicBlock forward. x_nchw: (N, C, H, W); w*: (C, C, 3, 3); g*, b*: (C,)."""
    N, C, H, W = x_nchw.shape
    NH, WC = N * H, W * C

    # NCHW -> lane-dense (N*H, W*C) (channels fastest on the lane axis).
    x2d = jnp.transpose(x_nchw, (0, 2, 3, 1)).reshape(NH, WC).astype(jnp.float32)

    def band(wgt):
        # (Cout, Cin, 3, 3) -> (3, W*C, W*C) block-banded matrices A_dy with
        # A_dy[w_in*C + ci, w_out*C + co] = wgt[co, ci, dy, w_in - w_out + 1]
        # (zero outside the 3-wide band -> horizontal padding is built in).
        wt = jnp.transpose(wgt, (2, 3, 1, 0)).astype(jnp.float32)  # (dy,dx,Ci,Co)
        w_in = jnp.arange(W)[:, None]
        w_out = jnp.arange(W)[None, :]
        dx = w_in - w_out + 1
        valid = ((dx >= 0) & (dx <= 2)).astype(jnp.float32)
        blocks = wt[:, jnp.clip(dx, 0, 2)] * valid[None, :, :, None, None]
        # (dy, w_in, w_out, Ci, Co) -> (dy, w_in*Ci, w_out*Co)
        return jnp.transpose(blocks, (0, 1, 3, 2, 4)).reshape(3, WC, WC)

    a1, a2 = band(w1), band(w2)

    def lane_dense(p):  # (C,) -> (1, W*C), value at lane w*C + c is p[c]
        return jnp.tile(p.astype(jnp.float32), W).reshape(1, WC)

    g1d, b1d = lane_dense(g1), lane_dense(b1)
    g2d, b2d = lane_dense(g2), lane_dense(b2)

    # Channel-sum matrix, prescaled by 1/(N*H*W) so the kernel's stat matmul
    # directly yields mean and E[x^2] (saves two in-kernel scaling passes).
    ch = jnp.arange(WC) % C
    s_mat = (ch[:, None] == ch[None, :]).astype(jnp.float32) / float(NH * W)

    full_spec = pl.BlockSpec((NH, WC), lambda i: (0, 0))
    band_spec = pl.BlockSpec((3, WC, WC), lambda i: (0, 0, 0))
    vec_spec = pl.BlockSpec((1, WC), lambda i: (0, 0))
    smat_spec = pl.BlockSpec((WC, WC), lambda i: (0, 0))

    flops = (2 * 3 * 2 * NH * WC * WC          # 6 conv band matmuls
             + 2 * 2 * 2 * WC * WC             # 2 stacked BN stat matmuls
             + 16 * NH * WC)                   # elementwise BN/ReLU/residual
    bytes_accessed = 4 * (2 * NH * WC + 2 * 3 * WC * WC + WC * WC + 4 * WC)

    out2d = pl.pallas_call(
        functools.partial(_basic_block_kernel, h=H),
        out_shape=jax.ShapeDtypeStruct((NH, WC), jnp.float32),
        grid_spec=pltpu.PrefetchScalarGridSpec(
            num_scalar_prefetch=0,
            grid=(1,),
            in_specs=[full_spec, band_spec, vec_spec, vec_spec,
                      band_spec, vec_spec, vec_spec, smat_spec],
            out_specs=full_spec,
        ),
        compiler_params=pltpu.CompilerParams(
            dimension_semantics=("arbitrary",)),
        cost_estimate=pl.CostEstimate(
            flops=flops, transcendentals=2 * WC,
            bytes_accessed=bytes_accessed),
    )(x2d, a1, g1d, b1d, a2, g2d, b2d, s_mat)

    # lane-dense (N*H, W*C) -> NCHW
    return jnp.transpose(out2d.reshape(N, H, W, C), (0, 3, 1, 2))


def _reference_forward(x, w1, g1, b1, w2, g2, b2):
    """Pure-JAX reference (NCHW, matches PyTorch train-mode BasicBlock)."""
    def conv(v, w):
        return jax.lax.conv_general_dilated(
            v, w, window_strides=(1, 1), padding=((1, 1), (1, 1)),
            dimension_numbers=("NCHW", "OIHW", "NCHW"),
            precision=jax.lax.Precision.HIGHEST)

    def bn(v, g, b):
        mean = jnp.mean(v, axis=(0, 2, 3), keepdims=True)
        var = jnp.mean((v - mean) ** 2, axis=(0, 2, 3), keepdims=True)
        return ((v - mean) * jax.lax.rsqrt(var + EPS)
                * g.reshape(1, -1, 1, 1) + b.reshape(1, -1, 1, 1))

    out = jnp.maximum(bn(conv(x, w1), g1, b1), 0.0)
    out = bn(conv(out, w2), g2, b2)
    return jnp.maximum(out + x, 0.0)


if __name__ == "__main__":
    # inplanes == planes, stride=1, downsample=None; W*C = 128 -> lane-dense.
    N, C, H, W = 2, 8, 16, 16

    key = jax.random.PRNGKey(0)
    kx, kw1, kw2, kg1, kb1, kg2, kb2 = jax.random.split(key, 7)

    x = jax.random.normal(kx, (N, C, H, W), jnp.float32)
    w1 = jax.random.normal(kw1, (C, C, 3, 3), jnp.float32) * 0.1
    w2 = jax.random.normal(kw2, (C, C, 3, 3), jnp.float32) * 0.1
    gamma1 = 1.0 + 0.1 * jax.random.normal(kg1, (C,), jnp.float32)
    beta1 = 0.1 * jax.random.normal(kb1, (C,), jnp.float32)
    gamma2 = 1.0 + 0.1 * jax.random.normal(kg2, (C,), jnp.float32)
    beta2 = 0.1 * jax.random.normal(kb2, (C,), jnp.float32)

    out = basic_block_forward(x, w1, gamma1, beta1, w2, gamma2, beta2)
    out = jax.block_until_ready(out)

    ref = _reference_forward(x, w1, gamma1, beta1, w2, gamma2, beta2)
    np.testing.assert_allclose(np.asarray(out), np.asarray(ref),
                               rtol=1e-3, atol=1e-3)

    print("KERNEL_OK")
</pallas_src>

<mosaic_0001>
module attributes {stable_mosaic.version = 11 : i64} {
  func.func @_basic_block_kernel(%arg0: i32, %arg1: memref<32x128xf32, #tpu.memory_space<vmem>>, %arg2: memref<3x128x128xf32, #tpu.memory_space<vmem>>, %arg3: memref<1x128xf32, #tpu.memory_space<vmem>>, %arg4: memref<1x128xf32, #tpu.memory_space<vmem>>, %arg5: memref<3x128x128xf32, #tpu.memory_space<vmem>>, %arg6: memref<1x128xf32, #tpu.memory_space<vmem>>, %arg7: memref<1x128xf32, #tpu.memory_space<vmem>>, %arg8: memref<128x128xf32, #tpu.memory_space<vmem>>, %arg9: memref<32x128xf32, #tpu.memory_space<vmem>>) attributes {dimension_semantics = [#tpu.dimension_semantics<arbitrary>], iteration_bounds = array<i64: 1>, scalar_prefetch = 0 : i64, scratch_operands = 0 : i64, tpu.core_type = #tpu.core_type<tc>, window_params = [{pipeline_mode = #tpu.pipeline_mode<synchronous>, transform_indices = @transform_0, window_bounds = array<i64: 32, 128>}, {pipeline_mode = #tpu.pipeline_mode<synchronous>, transform_indices = @transform_1, window_bounds = array<i64: 3, 128, 128>}, {pipeline_mode = #tpu.pipeline_mode<synchronous>, transform_indices = @transform_2, window_bounds = array<i64: 1, 128>}, {pipeline_mode = #tpu.pipeline_mode<synchronous>, transform_indices = @transform_3, window_bounds = array<i64: 1, 128>}, {pipeline_mode = #tpu.pipeline_mode<synchronous>, transform_indices = @transform_4, window_bounds = array<i64: 3, 128, 128>}, {pipeline_mode = #tpu.pipeline_mode<synchronous>, transform_indices = @transform_5, window_bounds = array<i64: 1, 128>}, {pipeline_mode = #tpu.pipeline_mode<synchronous>, transform_indices = @transform_6, window_bounds = array<i64: 1, 128>}, {pipeline_mode = #tpu.pipeline_mode<synchronous>, transform_indices = @transform_7, window_bounds = array<i64: 128, 128>}, {pipeline_mode = #tpu.pipeline_mode<synchronous>, transform_indices = @transform_8, window_bounds = array<i64: 32, 128>}]} {
    %c0 = arith.constant 0 : index
    %c0_0 = arith.constant 0 : index
    %0 = vector.load %arg1[%c0, %c0_0] : memref<32x128xf32, #tpu.memory_space<vmem>>, vector<32x128xf32>
    %1 = tpu.iota {dimensions = array<i32: 0>} : vector<32x128xi32>
    %c16_i32 = arith.constant 16 : i32
    %c0_i32 = arith.constant 0 : i32
    %2 = arith.cmpi eq, %c16_i32, %c0_i32 : i32
    %c1_i32 = arith.constant 1 : i32
    %3 = arith.select %2, %c1_i32, %c16_i32 : i32
    %4 = vector.broadcast %3 : i32 to vector<32x128xi32>
    %5 = arith.remsi %1, %4 : vector<32x128xi32>
    %c0_i32_1 = arith.constant 0 : i32
    %6 = vector.broadcast %c0_i32_1 : i32 to vector<32x128xi32>
    %7 = arith.cmpi ne, %5, %6 : vector<32x128xi32>
    %c0_i32_2 = arith.constant 0 : i32
    %8 = vector.broadcast %c0_i32_2 : i32 to vector<32x128xi32>
    %9 = arith.cmpi slt, %5, %8 : vector<32x128xi32>
    %c0_i32_3 = arith.constant 0 : i32
    %10 = arith.cmpi slt, %3, %c0_i32_3 : i32
    %11 = vector.broadcast %10 : i1 to vector<32x128xi1>
    %12 = vector.broadcast %11 : vector<32x128xi1> to vector<32x128xi1>
    %13 = arith.xori %9, %12 : vector<32x128xi1>
    %14 = arith.andi %13, %7 : vector<32x128xi1>
    %15 = vector.broadcast %3 : i32 to vector<32x128xi32>
    %16 = arith.addi %5, %15 : vector<32x128xi32>
    %17 = arith.select %14, %16, %5 : vector<32x128xi1>, vector<32x128xi32>
    %c0_i32_4 = arith.constant 0 : i32
    %18 = vector.broadcast %c0_i32_4 : i32 to vector<32x128xi32>
    %19 = arith.cmpi sgt, %17, %18 : vector<32x128xi32>
    %c15_i32 = arith.constant 15 : i32
    %20 = vector.broadcast %c15_i32 : i32 to vector<32x128xi32>
    %21 = arith.cmpi slt, %17, %20 : vector<32x128xi32>
    %cst = arith.constant 0.000000e+00 : f32
    %22 = vector.broadcast %cst : f32 to vector<1x128xf32>
    %23 = vector.extract_strided_slice %0 {offsets = [0, 0], sizes = [31, 128], strides = [1, 1]} : vector<32x128xf32> to vector<31x128xf32>
    %24 = tpu.concatenate %22, %23 in 0 : vector<1x128xf32>, vector<31x128xf32> -> vector<32x128xf32>
    %cst_5 = arith.constant 0.000000e+00 : f32
    %25 = vector.broadcast %cst_5 : f32 to vector<32x128xf32>
    %26 = arith.select %19, %24, %25 : vector<32x128xi1>, vector<32x128xf32>
    %27 = vector.extract_strided_slice %0 {offsets = [1, 0], sizes = [31, 128], strides = [1, 1]} : vector<32x128xf32> to vector<31x128xf32>
    %28 = tpu.concatenate %27, %22 in 0 : vector<31x128xf32>, vector<1x128xf32> -> vector<32x128xf32>
    %cst_6 = arith.constant 0.000000e+00 : f32
    %29 = vector.broadcast %cst_6 : f32 to vector<32x128xf32>
    %30 = arith.select %21, %28, %29 : vector<32x128xi1>, vector<32x128xf32>
    %c0_7 = arith.constant 0 : index
    %c0_8 = arith.constant 0 : index
    %c0_9 = arith.constant 0 : index
    %31 = vector.load %arg2[%c0_7, %c0_8, %c0_9] : memref<3x128x128xf32, #tpu.memory_space<vmem>>, vector<1x128x128xf32>
    %32 = vector.shape_cast %31 : vector<1x128x128xf32> to vector<128x128xf32>
    %cst_10 = arith.constant dense<0.000000e+00> : vector<32x128xf32>
    %33 = tpu.matmul %26, %32, %cst_10 {dimension_numbers = #tpu.dot_dimension_numbers<[1], [0], [0], [1], [0, 0, 1, 1], [], []>} : vector<32x128xf32>, vector<128x128xf32>, vector<32x128xf32> -> vector<32x128xf32>
    %c1 = arith.constant 1 : index
    %c0_11 = arith.constant 0 : index
    %c0_12 = arith.constant 0 : index
    %34 = vector.load %arg2[%c1, %c0_11, %c0_12] : memref<3x128x128xf32, #tpu.memory_space<vmem>>, vector<1x128x128xf32>
    %35 = vector.shape_cast %34 : vector<1x128x128xf32> to vector<128x128xf32>
    %cst_13 = arith.constant dense<0.000000e+00> : vector<32x128xf32>
    %36 = tpu.matmul %0, %35, %cst_13 {dimension_numbers = #tpu.dot_dimension_numbers<[1], [0], [0], [1], [0, 0, 1, 1], [], []>} : vector<32x128xf32>, vector<128x128xf32>, vector<32x128xf32> -> vector<32x128xf32>
    %37 = arith.addf %33, %36 : vector<32x128xf32>
    %c2 = arith.constant 2 : index
    %c0_14 = arith.constant 0 : index
    %c0_15 = arith.constant 0 : index
    %38 = vector.load %arg2[%c2, %c0_14, %c0_15] : memref<3x128x128xf32, #tpu.memory_space<vmem>>, vector<1x128x128xf32>
    %39 = vector.shape_cast %38 : vector<1x128x128xf32> to vector<128x128xf32>
    %cst_16 = arith.constant dense<0.000000e+00> : vector<32x128xf32>
    %40 = tpu.matmul %30, %39, %cst_16 {dimension_numbers = #tpu.dot_dimension_numbers<[1], [0], [0], [1], [0, 0, 1, 1], [], []>} : vector<32x128xf32>, vector<128x128xf32>, vector<32x128xf32> -> vector<32x128xf32>
    %41 = arith.addf %37, %40 : vector<32x128xf32>
    %cst_17 = arith.constant dense<0.000000e+00> : vector<128xf32>
    %42 = vector.multi_reduction <add>, %41, %cst_17 [0] : vector<32x128xf32> to vector<128xf32>
    %43 = vector.shape_cast %42 : vector<128xf32> to vector<1x128xf32>
    %44 = arith.mulf %41, %41 : vector<32x128xf32>
    %cst_18 = arith.constant dense<0.000000e+00> : vector<128xf32>
    %45 = vector.multi_reduction <add>, %44, %cst_18 [0] : vector<32x128xf32> to vector<128xf32>
    %46 = vector.shape_cast %45 : vector<128xf32> to vector<1x128xf32>
    %47 = tpu.concatenate %43, %46 in 0 : vector<1x128xf32>, vector<1x128xf32> -> vector<2x128xf32>
    %c0_19 = arith.constant 0 : index
    %c0_20 = arith.constant 0 : index
    %48 = vector.load %arg8[%c0_19, %c0_20] : memref<128x128xf32, #tpu.memory_space<vmem>>, vector<128x128xf32>
    %cst_21 = arith.constant dense<0.000000e+00> : vector<2x128xf32>
    %49 = tpu.matmul %47, %48, %cst_21 {dimension_numbers = #tpu.dot_dimension_numbers<[1], [0], [0], [1], [0, 0, 1, 1], [], []>} : vector<2x128xf32>, vector<128x128xf32>, vector<2x128xf32> -> vector<2x128xf32>
    %50 = vector.extract_strided_slice %49 {offsets = [0, 0], sizes = [1, 128], strides = [1, 1]} : vector<2x128xf32> to vector<1x128xf32>
    %51 = vector.extract_strided_slice %49 {offsets = [1, 0], sizes = [1, 128], strides = [1, 1]} : vector<2x128xf32> to vector<1x128xf32>
    %52 = arith.mulf %50, %50 : vector<1x128xf32>
    %53 = arith.subf %51, %52 : vector<1x128xf32>
    %cst_22 = arith.constant 9.99999974E-6 : f32
    %54 = vector.broadcast %cst_22 : f32 to vector<1x128xf32>
    %55 = arith.addf %53, %54 : vector<1x128xf32>
    %56 = math.rsqrt %55 : vector<1x128xf32>
    %57 = vector.broadcast %50 : vector<1x128xf32> to vector<32x128xf32>
    %58 = arith.subf %41, %57 : vector<32x128xf32>
    %c0_23 = arith.constant 0 : index
    %c0_24 = arith.constant 0 : index
    %59 = vector.load %arg3[%c0_23, %c0_24] : memref<1x128xf32, #tpu.memory_space<vmem>>, vector<1x128xf32>
    %60 = arith.mulf %56, %59 : vector<1x128xf32>
    %61 = vector.broadcast %60 : vector<1x128xf32> to vector<32x128xf32>
    %62 = arith.mulf %58, %61 : vector<32x128xf32>
    %c0_25 = arith.constant 0 : index
    %c0_26 = arith.constant 0 : index
    %63 = vector.load %arg4[%c0_25, %c0_26] : memref<1x128xf32, #tpu.memory_space<vmem>>, vector<1x128xf32>
    %64 = vector.broadcast %63 : vector<1x128xf32> to vector<32x128xf32>
    %65 = arith.addf %62, %64 : vector<32x128xf32>
    %cst_27 = arith.constant 0.000000e+00 : f32
    %66 = vector.broadcast %cst_27 : f32 to vector<32x128xf32>
    %67 = arith.maximumf %65, %66 : vector<32x128xf32>
    %68 = vector.extract_strided_slice %67 {offsets = [0, 0], sizes = [31, 128], strides = [1, 1]} : vector<32x128xf32> to vector<31x128xf32>
    %69 = tpu.concatenate %22, %68 in 0 : vector<1x128xf32>, vector<31x128xf32> -> vector<32x128xf32>
    %cst_28 = arith.constant 0.000000e+00 : f32
    %70 = vector.broadcast %cst_28 : f32 to vector<32x128xf32>
    %71 = arith.select %19, %69, %70 : vector<32x128xi1>, vector<32x128xf32>
    %72 = vector.extract_strided_slice %67 {offsets = [1, 0], sizes = [31, 128], strides = [1, 1]} : vector<32x128xf32> to vector<31x128xf32>
    %73 = tpu.concatenate %72, %22 in 0 : vector<31x128xf32>, vector<1x128xf32> -> vector<32x128xf32>
    %cst_29 = arith.constant 0.000000e+00 : f32
    %74 = vector.broadcast %cst_29 : f32 to vector<32x128xf32>
    %75 = arith.select %21, %73, %74 : vector<32x128xi1>, vector<32x128xf32>
    %c0_30 = arith.constant 0 : index
    %c0_31 = arith.constant 0 : index
    %c0_32 = arith.constant 0 : index
    %76 = vector.load %arg5[%c0_30, %c0_31, %c0_32] : memref<3x128x128xf32, #tpu.memory_space<vmem>>, vector<1x128x128xf32>
    %77 = vector.shape_cast %76 : vector<1x128x128xf32> to vector<128x128xf32>
    %cst_33 = arith.constant dense<0.000000e+00> : vector<32x128xf32>
    %78 = tpu.matmul %71, %77, %cst_33 {dimension_numbers = #tpu.dot_dimension_numbers<[1], [0], [0], [1], [0, 0, 1, 1], [], []>} : vector<32x128xf32>, vector<128x128xf32>, vector<32x128xf32> -> vector<32x128xf32>
    %c1_34 = arith.constant 1 : index
    %c0_35 = arith.constant 0 : index
    %c0_36 = arith.constant 0 : index
    %79 = vector.load %arg5[%c1_34, %c0_35, %c0_36] : memref<3x128x128xf32, #tpu.memory_space<vmem>>, vector<1x128x128xf32>
    %80 = vector.shape_cast %79 : vector<1x128x128xf32> to vector<128x128xf32>
    %cst_37 = arith.constant dense<0.000000e+00> : vector<32x128xf32>
    %81 = tpu.matmul %67, %80, %cst_37 {dimension_numbers = #tpu.dot_dimension_numbers<[1], [0], [0], [1], [0, 0, 1, 1], [], []>} : vector<32x128xf32>, vector<128x128xf32>, vector<32x128xf32> -> vector<32x128xf32>
    %82 = arith.addf %78, %81 : vector<32x128xf32>
    %c2_38 = arith.constant 2 : index
    %c0_39 = arith.constant 0 : index
    %c0_40 = arith.constant 0 : index
    %83 = vector.load %arg5[%c2_38, %c0_39, %c0_40] : memref<3x128x128xf32, #tpu.memory_space<vmem>>, vector<1x128x128xf32>
    %84 = vector.shape_cast %83 : vector<1x128x128xf32> to vector<128x128xf32>
    %cst_41 = arith.constant dense<0.000000e+00> : vector<32x128xf32>
    %85 = tpu.matmul %75, %84, %cst_41 {dimension_numbers = #tpu.dot_dimension_numbers<[1], [0], [0], [1], [0, 0, 1, 1], [], []>} : vector<32x128xf32>, vector<128x128xf32>, vector<32x128xf32> -> vector<32x128xf32>
    %86 = arith.addf %82, %85 : vector<32x128xf32>
    %cst_42 = arith.constant dense<0.000000e+00> : vector<128xf32>
    %87 = vector.multi_reduction <add>, %86, %cst_42 [0] : vector<32x128xf32> to vector<128xf32>
    %88 = vector.shape_cast %87 : vector<128xf32> to vector<1x128xf32>
    %89 = arith.mulf %86, %86 : vector<32x128xf32>
    %cst_43 = arith.constant dense<0.000000e+00> : vector<128xf32>
    %90 = vector.multi_reduction <add>, %89, %cst_43 [0] : vector<32x128xf32> to vector<128xf32>
    %91 = vector.shape_cast %90 : vector<128xf32> to vector<1x128xf32>
    %92 = tpu.concatenate %88, %91 in 0 : vector<1x128xf32>, vector<1x128xf32> -> vector<2x128xf32>
    %c0_44 = arith.constant 0 : index
    %c0_45 = arith.constant 0 : index
    %93 = vector.load %arg8[%c0_44, %c0_45] : memref<128x128xf32, #tpu.memory_space<vmem>>, vector<128x128xf32>
    %cst_46 = arith.constant dense<0.000000e+00> : vector<2x128xf32>
    %94 = tpu.matmul %92, %93, %cst_46 {dimension_numbers = #tpu.dot_dimension_numbers<[1], [0], [0], [1], [0, 0, 1, 1], [], []>} : vector<2x128xf32>, vector<128x128xf32>, vector<2x128xf32> -> vector<2x128xf32>
    %95 = vector.extract_strided_slice %94 {offsets = [0, 0], sizes = [1, 128], strides = [1, 1]} : vector<2x128xf32> to vector<1x128xf32>
    %96 = vector.extract_strided_slice %94 {offsets = [1, 0], sizes = [1, 128], strides = [1, 1]} : vector<2x128xf32> to vector<1x128xf32>
    %97 = arith.mulf %95, %95 : vector<1x128xf32>
    %98 = arith.subf %96, %97 : vector<1x128xf32>
    %cst_47 = arith.constant 9.99999974E-6 : f32
    %99 = vector.broadcast %cst_47 : f32 to vector<1x128xf32>
    %100 = arith.addf %98, %99 : vector<1x128xf32>
    %101 = math.rsqrt %100 : vector<1x128xf32>
    %102 = vector.broadcast %95 : vector<1x128xf32> to vector<32x128xf32>
    %103 = arith.subf %86, %102 : vector<32x128xf32>
    %c0_48 = arith.constant 0 : index
    %c0_49 = arith.constant 0 : index
    %104 = vector.load %arg6[%c0_48, %c0_49] : memref<1x128xf32, #tpu.memory_space<vmem>>, vector<1x128xf32>
    %105 = arith.mulf %101, %104 : vector<1x128xf32>
    %106 = vector.broadcast %105 : vector<1x128xf32> to vector<32x128xf32>
    %107 = arith.mulf %103, %106 : vector<32x128xf32>
    %c0_50 = arith.constant 0 : index
    %c0_51 = arith.constant 0 : index
    %108 = vector.load %arg7[%c0_50, %c0_51] : memref<1x128xf32, #tpu.memory_space<vmem>>, vector<1x128xf32>
    %109 = vector.broadcast %108 : vector<1x128xf32> to vector<32x128xf32>
    %110 = arith.addf %107, %109 : vector<32x128xf32>
    %111 = arith.addf %110, %0 : vector<32x128xf32>
    %cst_52 = arith.constant 0.000000e+00 : f32
    %112 = vector.broadcast %cst_52 : f32 to vector<32x128xf32>
    %113 = arith.maximumf %111, %112 : vector<32x128xf32>
    %c0_53 = arith.constant 0 : index
    %c0_54 = arith.constant 0 : index
    %114 = vector.load %arg9[%c0_53, %c0_54] : memref<32x128xf32, #tpu.memory_space<vmem>>, vector<32x128xf32>
    tpu.vector_store %arg9[%c0_53, %c0_54], %113 {strides = array<i32>} : memref<32x128xf32, #tpu.memory_space<vmem>>, vector<32x128xf32>,
    return
  }
  func.func @transform_0(%arg0: i32) -> (i32, i32) {
    %c0_i32 = arith.constant 0 : i32
    %c0_i32_0 = arith.constant 0 : i32
    %c0_i32_1 = arith.constant 0 : i32
    return %c0_i32, %c0_i32_0 : i32, i32
  }
  func.func @transform_1(%arg0: i32) -> (i32, i32, i32) {
    %c0_i32 = arith.constant 0 : i32
    %c0_i32_0 = arith.constant 0 : i32
    %c0_i32_1 = arith.constant 0 : i32
    %c0_i32_2 = arith.constant 0 : i32
    return %c0_i32, %c0_i32_0, %c0_i32_1 : i32, i32, i32
  }
  func.func @transform_2(%arg0: i32) -> (i32, i32) {
    %c0_i32 = arith.constant 0 : i32
    %c0_i32_0 = arith.constant 0 : i32
    %c0_i32_1 = arith.constant 0 : i32
    return %c0_i32, %c0_i32_0 : i32, i32
  }
  func.func @transform_3(%arg0: i32) -> (i32, i32) {
    %c0_i32 = arith.constant 0 : i32
    %c0_i32_0 = arith.constant 0 : i32
    %c0_i32_1 = arith.constant 0 : i32
    return %c0_i32, %c0_i32_0 : i32, i32
  }
  func.func @transform_4(%arg0: i32) -> (i32, i32, i32) {
    %c0_i32 = arith.constant 0 : i32
    %c0_i32_0 = arith.constant 0 : i32
    %c0_i32_1 = arith.constant 0 : i32
    %c0_i32_2 = arith.constant 0 : i32
    return %c0_i32, %c0_i32_0, %c0_i32_1 : i32, i32, i32
  }
  func.func @transform_5(%arg0: i32) -> (i32, i32) {
    %c0_i32 = arith.constant 0 : i32
    %c0_i32_0 = arith.constant 0 : i32
    %c0_i32_1 = arith.constant 0 : i32
    return %c0_i32, %c0_i32_0 : i32, i32
  }
  func.func @transform_6(%arg0: i32) -> (i32, i32) {
    %c0_i32 = arith.constant 0 : i32
    %c0_i32_0 = arith.constant 0 : i32
    %c0_i32_1 = arith.constant 0 : i32
    return %c0_i32, %c0_i32_0 : i32, i32
  }
  func.func @transform_7(%arg0: i32) -> (i32, i32) {
    %c0_i32 = arith.constant 0 : i32
    %c0_i32_0 = arith.constant 0 : i32
    %c0_i32_1 = arith.constant 0 : i32
    return %c0_i32, %c0_i32_0 : i32, i32
  }
  func.func @transform_8(%arg0: i32) -> (i32, i32) {
    %c0_i32 = arith.constant 0 : i32
    %c0_i32_0 = arith.constant 0 : i32
    %c0_i32_1 = arith.constant 0 : i32
    return %c0_i32, %c0_i32_0 : i32, i32
  }
}

</mosaic_0001>

<bundles_post_ra>
// kernel: tile.23
= control target key start
LH: loop header
LB: loop body
LE: loop exit
PB: predicated region body
PF: predicated region fallthrough
CT: control target
= control target key end

     0   :  { %s28_s0 = inlined_call_operand.vmem [shape: f32[8], index: 0, kind: input, shape index: {}]   ;;  %s29_s1 = inlined_call_operand.vmem [shape: f32[16,8], index: 1, kind: output, shape index: {}]  }
   0x1   :  { %v4_v0 = vld [vmem:[%s28_s0] ss:$0 sm:$0xff] }
   0x2   :  { %5 = vst [vmem:[%s29_s1] sm:$0xff] %v4_v0  ;;  %8 = vst [vmem:[%s29_s1 + $0x8] sm:$0xff] %v4_v0 }

// kernel: tile.24
= control target key start
LH: loop header
LB: loop body
LE: loop exit
PB: predicated region body
PF: predicated region fallthrough
CT: control target
= control target key end

     0   :  { %s131_s10 = smov 120   ;;  %s132_s11 = smov 104   ;;  %vm3_vm0 = vcmask 64512   ;;  %vm9_vm1 = vcmask 1048512   ;;  %vm15_vm2 = vcmask 982912   ;;  %vm21_vm3 = vcmask 917312   ;;  %s207_s0 = inlined_call_operand.vmem [shape: f32[16,8], index: 0, kind: input, shape index: {}]   ;;  %s208_s1 = inlined_call_operand.vmem [shape: f32[1,128], index: 1, kind: output, shape index: {}]  }
   0x1   :  { %v101_v0 = vld [vmem:[%s207_s0 + $0xf] sm:$0x1]   ;;  %v103_v1 = vld [vmem:[%s207_s0 + $0xd] sm:$0x1]   ;;  %v102_v2 = vld [vmem:[%s207_s0 + $0xe] sm:$0x1]  }
   0x2   :  { %7 = vrot.lane.b32.xlu0 %v101_v0, %s131_s10  ;;  %19 = vrot.lane.b32.xlu1 %v103_v1, %s132_s11  ;;  %v104_v3 = vld [vmem:[%s207_s0 + $0xc] sm:$0x1]   ;;  %s133_s16 = smov 112   ;;  %s134_s17 = smov 96   ;;  %v105_v4 = vld [vmem:[%s207_s0 + $0xb] sm:$0x1]  }
   0x3   :  { %v106_v5 = vld [vmem:[%s207_s0 + $0xa] sm:$0x1]   ;;  %v2_v6 = vld [vmem:[%s207_s0] sm:$0x1]   ;;  %s135_s24 = smov 88   ;;  %s136_s25 = smov 80  }
   0x4   :  { %4 = vst.msk [vmem:[#allocation0] sm:$0x1] %vm3_vm0, %v2_v6   ;;  %v107_v7 = vld [vmem:[%s207_s0 + $0x9] sm:$0x1]   ;;  %v108_v8 = vld [vmem:[%s207_s0 + $0x8] sm:$0x1]  }
   0x5   :  { %s137_s30 = smov 72   ;;  %s138_s2 = smov 64   ;;  %v109_v9 = vld [vmem:[%s207_s0 + $0x7] sm:$0x1]   ;;  %v110_v10 = vld [vmem:[%s207_s0 + $0x6] sm:$0x1]  }
   0x6   :  { %13 = vrot.lane.b32.xlu0 %v102_v2, %s133_s16  ;;  %25 = vrot.lane.b32.xlu1 %v104_v3, %s134_s17  ;;  %s139_s7 = smov 56   ;;  %s140_s8 = smov 48   ;;  %v111_v11 = vld [vmem:[%s207_s0 + $0x5] sm:$0x1]   ;;  %v112_v12 = vld [vmem:[%s207_s0 + $0x4] sm:$0x1]  }
   0x7   :  { %s141_s13 = smov 40   ;;  %s142_s14 = smov 32   ;;  %v113_v13 = vld [vmem:[%s207_s0 + $0x3] sm:$0x1]   ;;  %v114_v14 = vld [vmem:[%s207_s0 + $0x2] sm:$0x1]  }
   0x8   :  { %s143_s19 = smov 24   ;;  %s144_s20 = smov 16   ;;  %v115_v15 = vld [vmem:[%s207_s0 + $0x1] sm:$0x1]   ;;  %vm27_vm4 = vcmask 851712   ;;  %vm33_vm5 = vcmask 786112  }
   0x9   :  { %s145_s0 = smov 8   ;;  %vm39_vm6 = vcmask 720512   ;;  %vm45_vm7 = vcmask 654912   ;;  %vm51_vm8 = vcmask 589312   ;;  %vm57_vm9 = vcmask 523712  }
   0xa   :  { %31 = vrot.lane.b32.xlu0 %v105_v4, %s135_s24  ;;  %37 = vrot.lane.b32.xlu1 %v106_v5, %s136_s25  ;;  %vm63_vm10 = vcmask 458112   ;;  %vm69_vm11 = vcmask 392512   ;;  %vm75_vm12 = vcmask 326912   ;;  %vm81_vm13 = vcmask 261312  }
   0xb   :  { %vm87_vm14 = vcmask 195712   ;;  %vm93_vm15 = vcmask 130112  }
   0xe   :  { %43 = vrot.lane.b32.xlu0 %v107_v7, %s137_s30  ;;  %49 = vrot.lane.b32.xlu1 %v108_v8, %s138_s2 }
  0x12   :  { %55 = vrot.lane.b32.xlu0 %v109_v9, %s139_s7  ;;  %61 = vrot.lane.b32.xlu1 %v110_v10, %s140_s8 }
  0x16   :  { %67 = vrot.lane.b32.xlu0 %v111_v11, %s141_s13  ;;  %73 = vrot.lane.b32.xlu1 %v112_v12, %s142_s14 }
  0x1a   :  { %79 = vrot.lane.b32.xlu0 %v113_v13, %s143_s19  ;;  %85 = vrot.lane.b32.xlu1 %v114_v14, %s144_s20 }
  0x1e   :  { %91 = vrot.lane.b32.xlu0 %v115_v15, %s145_s0 }
  0x74   :  { %v8_v16 = vpop.permute.xlu0 %7   ;;  %v20_v17 = vpop.permute.xlu1 %19  }
  0x75   :  { %10 = vst.msk [vmem:[#allocation0] sm:$0x1] %vm9_vm1, %v8_v16  }
  0x78   :  { %v14_v18 = vpop.permute.xlu0 %13   ;;  %v26_v19 = vpop.permute.xlu1 %25  }
  0x79   :  { %16 = vst.msk [vmem:[#allocation0] sm:$0x1] %vm15_vm2, %v14_v18  }
  0x7a   :  { %22 = vst.msk [vmem:[#allocation0] sm:$0x1] %vm21_vm3, %v20_v17  }
  0x7b   :  { %28 = vst.msk [vmem:[#allocation0] sm:$0x1] %vm27_vm4, %v26_v19  }
  0x7c   :  { %v32_v20 = vpop.permute.xlu0 %31   ;;  %v38_v21 = vpop.permute.xlu1 %37  }
  0x7d   :  { %34 = vst.msk [vmem:[#allocation0] sm:$0x1] %vm33_vm5, %v32_v20  }
  0x7e   :  { %40 = vst.msk [vmem:[#allocation0] sm:$0x1] %vm39_vm6, %v38_v21  }
  0x80   :  { %v44_v22 = vpop.permute.xlu0 %43   ;;  %v50_v23 = vpop.permute.xlu1 %49  }
  0x81   :  { %46 = vst.msk [vmem:[#allocation0] sm:$0x1] %vm45_vm7, %v44_v22  }
  0x82   :  { %52 = vst.msk [vmem:[#allocation0] sm:$0x1] %vm51_vm8, %v50_v23  }
  0x84   :  { %v56_v24 = vpop.permute.xlu0 %55   ;;  %v62_v25 = vpop.permute.xlu1 %61  }
  0x85   :  { %58 = vst.msk [vmem:[#allocation0] sm:$0x1] %vm57_vm9, %v56_v24  }
  0x86   :  { %64 = vst.msk [vmem:[#allocation0] sm:$0x1] %vm63_vm10, %v62_v25  }
  0x88   :  { %v68_v26 = vpop.permute.xlu0 %67   ;;  %v74_v27 = vpop.permute.xlu1 %73  }
  0x89   :  { %70 = vst.msk [vmem:[#allocation0] sm:$0x1] %vm69_vm11, %v68_v26  }
  0x8a   :  { %76 = vst.msk [vmem:[#allocation0] sm:$0x1] %vm75_vm12, %v74_v27  }
  0x8c   :  { %v80_v28 = vpop.permute.xlu0 %79   ;;  %v86_v29 = vpop.permute.xlu1 %85  }
  0x8d   :  { %82 = vst.msk [vmem:[#allocation0] sm:$0x1] %vm81_vm13, %v80_v28  }
  0x8e   :  { %88 = vst.msk [vmem:[#allocation0] sm:$0x1] %vm87_vm14, %v86_v29  }
  0x90   :  { %v92_v30 = vpop.permute.xlu0 %91  }
  0x91   :  { %94 = vst.msk [vmem:[#allocation0] sm:$0x1] %vm93_vm15, %v92_v30  }
  0x98   :  { %v98_v31 = vld [vmem:[#allocation0] sm:$0x1] }
  0x99   :  { %100 = vst [vmem:[%s208_s1] sm:$0x1] %v98_v31 }

// kernel: basic_block_forward.1
= control target key start
LH: loop header
LB: loop body
LE: loop exit
PB: predicated region body
PF: predicated region fallthrough
CT: control target
= control target key end

     0   :  { %v1883_v3 = vmov 0.0|0.0   ;;  %v33_v32 = vlaneseq  ;;  %vm98_vm0 = vcmask 1040384   ;;  %vm115_vm3 = vcmask 1046528   ;;  %s2456_s1 = inlined_call_operand.vmem [shape: f32[3,128,128], index: 1, kind: input, shape index: {}]   ;;  %s2457_s0 = inlined_call_operand.vmem [shape: f32[32,128], index: 0, kind: input, shape index: {}]   ;;  %s2458_s7 = inlined_call_operand.vmem [shape: f32[128,128], index: 7, kind: input, shape index: {}]   ;;  %s2459_s4 = inlined_call_operand.vmem [shape: f32[3,128,128], index: 4, kind: input, shape index: {}]   ;;  %s2460_s2 = inlined_call_operand.vmem [shape: f32[1,128], index: 2, kind: input, shape index: {}]   ;;  %s2461_s3 = inlined_call_operand.vmem [shape: f32[1,128], index: 3, kind: input, shape index: {}]   ;;  %s2462_s5 = inlined_call_operand.vmem [shape: f32[1,128], index: 5, kind: input, shape index: {}]   ;;  %s2463_s6 = inlined_call_operand.vmem [shape: f32[1,128], index: 6, kind: input, shape index: {}]   ;;  %s2464_s8 = inlined_call_operand.vmem [shape: f32[32,128], index: 8, kind: output, shape index: {}]  }
   0x1   :  { %v1092_v0 = vld [vmem:[%s2456_s1 + $0x80] sm:$0xff]  ;;  %v1093_v1 = vld [vmem:[%s2456_s1 + $0x88] sm:$0xff]  ;;  %v1094_v2 = vld [vmem:[%s2456_s1 + $0x90] sm:$0xff]  ;;  %1716 = vmatprep.subr.bf16.mxu1 %v1883_v3  ;;  %vm1884_vm6 = vmmov 0  }
   0x2   :  { %v1620_v4 = vpack.c.bf16 %v1093_v1, %v1092_v0  ;;  %v1095_v5 = vld [vmem:[%s2456_s1 + $0x98] sm:$0xff]  ;;  %v1096_v7 = vld [vmem:[%s2456_s1 + $0xa0] sm:$0xff]  ;;  %v1097_v8 = vld [vmem:[%s2456_s1 + $0xa8] sm:$0xff]  ;;  %v2012_v36 = vshrl.u32 %v33_v32, 7 }
   0x3   :  { %v1624_v6 = vpack.c.bf16 %v1095_v5, %v1094_v2  ;;  %v1628_v9 = vpack.c.bf16 %v1097_v8, %v1096_v7  ;;  %v1953_v10 = vld [vmem:[%s2457_s0] sm:$0xff]  ;;  %v1098_v11 = vld [vmem:[%s2456_s1 + $0xb0] sm:$0xff]  ;;  %v1099_v12 = vld [vmem:[%s2456_s1 + $0xb8] sm:$0xff] }
   0x4   :  { %1621 = vmatprep.subr.bf16.mxu0 %v1620_v4  ;;  %1354 = vmatprep.mubr.f32.mxu0 %v1953_v10  ;;  %v1632_v13 = vpack.c.bf16 %v1099_v12, %v1098_v11  ;;  %v1100_v14 = vld [vmem:[%s2456_s1 + $0xc0] sm:$0xff]  ;;  %v1101_v15 = vld [vmem:[%s2456_s1 + $0xc8] sm:$0xff]  ;;  %v1102_v17 = vld [vmem:[%s2456_s1 + $0xd0] sm:$0xff]  ;;  %v42_v42 = vand.u32 15, %v2012_v36  ;;  %v99_v43 = vrot.slane %v1953_v10, 7  ;;  %v36_v1 = vadd.s32 16, %v2012_v36 }
   0x5   :  { %1623 = vmatpush3.bf16.msra.mxu0 %v1620_v4  ;;  %v1636_v16 = vpack.c.bf16 %v1101_v15, %v1100_v14  ;;  %v1103_v18 = vld [vmem:[%s2456_s1 + $0xd8] sm:$0xff]  ;;  %v1104_v20 = vld [vmem:[%s2456_s1 + $0xe0] sm:$0xff]  ;;  %v465_v22 = vld [vmem:[%s2458_s7 + $0x8] sm:$0xff]  ;;  %v116_v14 = vrot.slane %v1953_v10, 1 }
   0x6   :  { %1625 = vmatprep.subr.bf16.mxu0 %v1624_v6  ;;  %v1640_v19 = vpack.c.bf16 %v1103_v18, %v1102_v17  ;;  %v464_v21 = vld [vmem:[%s2458_s7] sm:$0xff]  ;;  %v1105_v23 = vld [vmem:[%s2456_s1 + $0xe8] sm:$0xff]  ;;  %v466_v25 = vld [vmem:[%s2458_s7 + $0x10] sm:$0xff]  ;;  %vm2045_vm1 = vcmp.gt.s32.totalorder %v42_v42, 0  ;;  %v110_v49 = vsel %vm98_vm0, 0.0, %v99_v43  ;;  %v56_v8 = vand.u32 15, %v36_v1 }
   0x7   :  { %v1986_v24 = vpack.c.bf16 %v465_v22, %v464_v21  ;;  %v467_v26 = vld [vmem:[%s2458_s7 + $0x18] sm:$0xff]  ;;  %v1644_v28 = vpack.c.bf16 %v1105_v23, %v1104_v20  ;;  %v1106_v29 = vld [vmem:[%s2456_s1 + $0xf0] sm:$0xff]  ;;  %v132_v33 = vld [vmem:[%s2456_s1] sm:$0xff] }
   0x8   :  { %v1995_v27 = vpack.c.bf16 %v467_v26, %v466_v25  ;;  %v1107_v30 = vld [vmem:[%s2456_s1 + $0xf8] sm:$0xff]  ;;  %v133_v34 = vld [vmem:[%s2456_s1 + $0x8] sm:$0xff]  ;;  %v134_v37 = vld [vmem:[%s2456_s1 + $0x10] sm:$0xff]  ;;  %vm2101_vm2 = vcmp.gt.s32.totalorder %v56_v8, 0 }
   0x9   :  { %1627 = vmatpush3.bf16.msra.mxu0 %v1624_v6  ;;  %1718 = vmatpush3.bf16.msra.mxu1 %v1986_v24  ;;  %v1648_v31 = vpack.c.bf16 %v1107_v30, %v1106_v29  ;;  %v1652_v35 = vpack.c.bf16 %v133_v34, %v132_v33  ;;  %v135_v38 = vld [vmem:[%s2456_s1 + $0x18] sm:$0xff]  ;;  %v2023_v39 = vld [vmem:[%s2457_s0 + $0x8] sm:$0xff]  ;;  %v2028_v41 = vld [vmem:[%s2457_s0 + $0x10] sm:$0xff] }
   0xa   :  { %1629 = vmatprep.subr.bf16.mxu0 %v1628_v9  ;;  %1719 = vmatprep.subr.bf16.mxu1 %v1883_v3  ;;  %v1656_v40 = vpack.c.bf16 %v135_v38, %v134_v37  ;;  %v136_v44 = vld [vmem:[%s2456_s1 + $0x20] sm:$0xff]  ;;  %v137_v45 = vld [vmem:[%s2456_s1 + $0x28] sm:$0xff]  ;;  %v2043_v46 = vld [vmem:[%s2457_s0 + $0x18] sm:$0xff]  ;;  %v100_v5 = vrot.slane %v2023_v39, 7  ;;  %v102_v6 = vrot.slane %v2028_v41, 7  ;;  %v117_v18 = vrot.slane %v2023_v39, 1 }
   0xb   :  { %v1660_v47 = vpack.c.bf16 %v137_v45, %v136_v44  ;;  %v138_v50 = vld [vmem:[%s2456_s1 + $0x30] sm:$0xff]  ;;  %v139_v51 = vld [vmem:[%s2456_s1 + $0x38] sm:$0xff]  ;;  %v140_v53 = vld [vmem:[%s2456_s1 + $0x40] sm:$0xff]  ;;  %v119_v45 = vrot.slane %v2028_v41, 1 }
   0xc   :  { %v1664_v52 = vpack.c.bf16 %v139_v51, %v138_v50  ;;  %v141_v54 = vld [vmem:[%s2456_s1 + $0x48] sm:$0xff]  ;;  %v142_v56 = vld [vmem:[%s2456_s1 + $0x50] sm:$0xff]  ;;  %v143_v57 = vld [vmem:[%s2456_s1 + $0x58] sm:$0xff]  ;;  %v101_v12 = vsel %vm98_vm0, %v99_v43, %v100_v5  ;;  %v103_v17 = vsel %vm98_vm0, %v100_v5, %v102_v6  ;;  %v118_v23 = vsel %vm115_vm3, %v116_v14, %v117_v18 }
   0xd   :  { %1631 = vmatpush3.bf16.msra.mxu0 %v1628_v9  ;;  %1721 = vmatpush3.bf16.msra.mxu1 %v1995_v27  ;;  %v1668_v55 = vpack.c.bf16 %v141_v54, %v140_v53  ;;  %v1672_v58 = vpack.c.bf16 %v143_v57, %v142_v56  ;;  %v144_v59 = vld [vmem:[%s2456_s1 + $0x60] sm:$0xff]  ;;  %v145_v60 = vld [vmem:[%s2456_s1 + $0x68] sm:$0xff]  ;;  %v146_v62 = vld [vmem:[%s2456_s1 + $0x70] sm:$0xff]  ;;  %v35_v43 = vadd.s32 8, %v2012_v36  ;;  %v121_v50 = vrot.slane %v2043_v46, 1 }
   0xe   :  { %1633 = vmatprep.subr.bf16.mxu0 %v1632_v13  ;;  %1722 = vmatprep.subr.bf16.mxu1 %v1883_v3  ;;  %v1676_v61 = vpack.c.bf16 %v145_v60, %v144_v59  ;;  %v147_v63 = vld [vmem:[%s2456_s1 + $0x78] sm:$0xff]  ;;  %v1110_v2 = vld [vmem:[%s2456_s1 + $0x100] sm:$0xff]  ;;  %v1111_v4 = vld [vmem:[%s2456_s1 + $0x108] sm:$0xff] }
   0xf   :  { %v1680_v0 = vpack.c.bf16 %v147_v63, %v146_v62  ;;  %v1684_v7 = vpack.c.bf16 %v1111_v4, %v1110_v2  ;;  %v1112_v9 = vld [vmem:[%s2456_s1 + $0x110] sm:$0xff]  ;;  %v1113_v11 = vld [vmem:[%s2456_s1 + $0x118] sm:$0xff]  ;;  %v1115_v20 = vld [vmem:[%s2456_s1 + $0x128] sm:$0xff]  ;;  %v122_v54 = vsel %vm115_vm3, %v119_v45, %v121_v50  ;;  %v127_v56 = vsel %vm115_vm3, %v121_v50, 0.0 }
  0x10   :  { %v1688_v15 = vpack.c.bf16 %v1113_v11, %v1112_v9  ;;  %v1116_v25 = vld [vmem:[%s2456_s1 + $0x130] sm:$0xff]  ;;  %v1117_v26 = vld [vmem:[%s2456_s1 + $0x138] sm:$0xff]  ;;  %v1118_v29 = vld [vmem:[%s2456_s1 + $0x140] sm:$0xff]  ;;  %v1885_v9 = vmov 0.0  }
  0x11   :  { %1635 = vmatpush3.bf16.msra.mxu0 %v1632_v13  ;;  %v104_v13 = vrot.slane %v2043_v46, 7  ;;  %v1119_v30 = vld [vmem:[%s2456_s1 + $0x148] sm:$0xff]  ;;  %v1120_v32 = vld [vmem:[%s2456_s1 + $0x150] sm:$0xff]  ;;  %v1121_v33 = vld [vmem:[%s2456_s1 + $0x158] sm:$0xff]  ;;  %1468 = vmatprep.mubr.msk.f32.mxu1 %vm1884_vm6, %v1885_v9 }
  0x12   :  { %1637 = vmatprep.subr.bf16.mxu0 %v1636_v16  ;;  %v1704_v34 = vpack.c.bf16 %v1121_v33, %v1120_v32  ;;  %v1123_v37 = vld [vmem:[%s2456_s1 + $0x168] sm:$0xff]  ;;  %v1125_v42 = vld [vmem:[%s2456_s1 + $0x178] sm:$0xff]  ;;  %v468_v57 = vld [vmem:[%s2458_s7 + $0x20] sm:$0xff] }
  0x13   :  { %v105_v21 = vsel %vm98_vm0, %v102_v6, %v104_v13  ;;  %v473_v62 = vld [vmem:[%s2458_s7 + $0x48] sm:$0xff]  ;;  %v475_v1 = vld [vmem:[%s2458_s7 + $0x58] sm:$0xff]  ;;  %v476_v4 = vld [vmem:[%s2458_s7 + $0x60] sm:$0xff] }
  0x14   :  { %v477_v5 = vld [vmem:[%s2458_s7 + $0x68] sm:$0xff]  ;;  %v479_v8 = vld [vmem:[%s2458_s7 + $0x78] sm:$0xff] }
  0x15   :  { %1639 = vmatpush3.bf16.msra.mxu0 %v1636_v16  ;;  %v1735_v6 = vpack.c.bf16 %v477_v5, %v476_v4  ;;  %v1131_v13 = vld [vmem:[%s2459_s4 + $0x88] sm:$0xff]  ;;  %v1133_v50 = vld [vmem:[%s2459_s4 + $0x98] sm:$0xff]  ;;  %v1144_v4 = vld [vmem:[%s2459_s4 + $0xf0] sm:$0xff] }
  0x16   :  { %1641 = vmatprep.subr.bf16.mxu0 %v1640_v19  ;;  %v1145_v5 = vld [vmem:[%s2459_s4 + $0xf8] sm:$0xff]  ;;  %v1156_v16 = vld [vmem:[%s2459_s4 + $0x140] sm:$0xff] }
  0x17   :  { %v643_v48 = vld [vmem:[%s2459_s4 + $0x58] sm:$0xff] }
  0x19   :  { %1643 = vmatpush3.bf16.msra.mxu0 %v1640_v19  ;;  %v1114_v19 = vld [vmem:[%s2456_s1 + $0x120] sm:$0xff] }
  0x1a   :  { %1645 = vmatprep.subr.bf16.mxu0 %v1644_v28  ;;  %v1692_v22 = vpack.c.bf16 %v1115_v20, %v1114_v19 }
  0x1d   :  { %1647 = vmatpush3.bf16.msra.mxu0 %v1644_v28  ;;  %v1696_v28 = vpack.c.bf16 %v1117_v26, %v1116_v25 }
  0x1e   :  { %1649 = vmatprep.subr.bf16.mxu0 %v1648_v31 }
  0x21   :  { %1651 = vmatpush3.bf16.msra.mxu0 %v1648_v31  ;;  %v1700_v31 = vpack.c.bf16 %v1119_v30, %v1118_v29 }
  0x22   :  { %1653 = vmatprep.subr.bf16.mxu0 %v1652_v35 }
  0x24   :  { %1355 = vmatmul.mubr.f32.vlgmr.msra.gmra.mrb[0].mxu0 %v2023_v39 }
  0x25   :  { %1655 = vmatpush3.bf16.msra.mxu0 %v1652_v35  ;;  %1357 = vmatprep.mubr.f32.mxu0 %v2028_v41  ;;  %v1122_v35 = vld [vmem:[%s2456_s1 + $0x160] sm:$0xff] }
  0x26   :  { %1657 = vmatprep.subr.bf16.mxu0 %v1656_v40  ;;  %v1708_v38 = vpack.c.bf16 %v1123_v37, %v1122_v35 }
  0x28   :  { %1358 = vmatmul.mubr.f32.gmra.mrb[2].mxu0 %v2043_v46 }
  0x29   :  { %1659 = vmatpush3.bf16.msra.mxu0 %v1656_v40  ;;  %1392 = vmatprep.mubr.msk.f32.mxu0 %vm2045_vm1, %v110_v49  ;;  %v1124_v40 = vld [vmem:[%s2456_s1 + $0x170] sm:$0xff]  ;;  %v37_v49 = vadd.s32 24, %v2012_v36 }
  0x2a   :  { %1661 = vmatprep.subr.bf16.mxu0 %v1660_v47  ;;  %v1712_v44 = vpack.c.bf16 %v1125_v42, %v1124_v40 }
  0x2b   :  { %v63_v53 = vand.u32 15, %v37_v49  ;;  %v1132_v49 = vld [vmem:[%s2459_s4 + $0x90] sm:$0xff] }
  0x2d   :  { %1663 = vmatpush3.bf16.msra.mxu0 %v1660_v47  ;;  %v49_v47 = vand.u32 15, %v35_v43  ;;  %vm2160_vm5 = vcmp.lt.s32.totalorder %v63_v53, 15  ;;  %v1134_v53 = vld [vmem:[%s2459_s4 + $0xa0] sm:$0xff] }
  0x2e   :  { %1665 = vmatprep.subr.bf16.mxu0 %v1664_v52 }
  0x2f   :  { %vm2151_vm4 = vcmp.lt.s32.totalorder %v49_v47, 15 }
  0x31   :  { %1667 = vmatpush3.bf16.msra.mxu0 %v1664_v52  ;;  %v120_v52 = vsel %vm115_vm3, %v117_v18, %v119_v45 }
  0x32   :  { %1669 = vmatprep.subr.bf16.mxu0 %v1668_v55 }
  0x35   :  { %1671 = vmatpush3.bf16.msra.mxu0 %v1668_v55 }
  0x36   :  { %1673 = vmatprep.subr.bf16.mxu0 %v1672_v58 }
  0x39   :  { %1675 = vmatpush3.bf16.msra.mxu0 %v1672_v58  ;;  %v469_v58 = vld [vmem:[%s2458_s7 + $0x28] sm:$0xff] }
  0x3a   :  { %1677 = vmatprep.subr.bf16.mxu0 %v1676_v61  ;;  %v1723_v59 = vpack.c.bf16 %v469_v58, %v468_v57  ;;  %v1136_v57 = vld [vmem:[%s2459_s4 + $0xb0] sm:$0xff]  ;;  %v1137_v58 = vld [vmem:[%s2459_s4 + $0xb8] sm:$0xff] }
  0x3c   :  { %1724 = vmatpush3.bf16.msra.mxu1 %v1723_v59 }
  0x3d   :  { %1679 = vmatpush3.bf16.msra.mxu0 %v1676_v61  ;;  %1725 = vmatprep.subr.bf16.mxu1 %v1883_v3  ;;  %v472_v61 = vld [vmem:[%s2458_s7 + $0x40] sm:$0xff] }
  0x3e   :  { %1681 = vmatprep.subr.bf16.mxu0 %v1680_v0  ;;  %v1729_v63 = vpack.c.bf16 %v473_v62, %v472_v61  ;;  %v1140_v61 = vld [vmem:[%s2459_s4 + $0xd0] sm:$0xff]  ;;  %v1141_v62 = vld [vmem:[%s2459_s4 + $0xd8] sm:$0xff] }
  0x41   :  { %1683 = vmatpush3.bf16.msra.mxu0 %v1680_v0  ;;  %v474_v0 = vld [vmem:[%s2458_s7 + $0x50] sm:$0xff] }
  0x42   :  { %1685 = vmatprep.subr.bf16.mxu0 %v1684_v7  ;;  %v1732_v2 = vpack.c.bf16 %v475_v1, %v474_v0  ;;  %v1142_v0 = vld [vmem:[%s2459_s4 + $0xe0] sm:$0xff]  ;;  %v1143_v1 = vld [vmem:[%s2459_s4 + $0xe8] sm:$0xff] }
  0x44   :  { %1393 = vmatmul.mubr.f32.vlgmr.msra.gmra.mrb[0].mxu0 %v101_v12  ;;  %v1130_v12 = vld [vmem:[%s2459_s4 + $0x80] sm:$0xff] }
  0x45   :  { %1687 = vmatpush3.bf16.msra.mxu0 %v1684_v7  ;;  %1395 = vmatprep.mubr.msk.f32.mxu0 %vm2101_vm2, %v103_v17  ;;  %v478_v7 = vld [vmem:[%s2458_s7 + $0x70] sm:$0xff]  ;;  %v1740_v14 = vpack.c.bf16 %v1131_v13, %v1130_v12 }
  0x46   :  { %1689 = vmatprep.subr.bf16.mxu0 %v1688_v15  ;;  %v1738_v11 = vpack.c.bf16 %v479_v8, %v478_v7  ;;  %v632_v7 = vld [vmem:[%s2459_s4] sm:$0xff]  ;;  %v633_v8 = vld [vmem:[%s2459_s4 + $0x8] sm:$0xff] }
  0x48   :  { %1396 = vmatmul.mubr.f32.gmra.mrb[2].mxu0 %v105_v21 }
  0x49   :  { %1691 = vmatpush3.bf16.msra.mxu0 %v1688_v15  ;;  %1430 = vmatprep.mubr.f32.mxu0 %v118_v23 }
  0x4a   :  { %1693 = vmatprep.subr.bf16.mxu0 %v1692_v22 }
  0x4d   :  { %1695 = vmatpush3.bf16.msra.mxu0 %v1692_v22 }
  0x4e   :  { %1697 = vmatprep.subr.bf16.mxu0 %v1696_v28 }
  0x51   :  { %1699 = vmatpush3.bf16.msra.mxu0 %v1696_v28 }
  0x52   :  { %1701 = vmatprep.subr.bf16.mxu0 %v1700_v31 }
  0x55   :  { %1703 = vmatpush3.bf16.msra.mxu0 %v1700_v31 }
  0x56   :  { %1705 = vmatprep.subr.bf16.mxu0 %v1704_v34 }
  0x59   :  { %1707 = vmatpush3.bf16.msra.mxu0 %v1704_v34 }
  0x5a   :  { %1709 = vmatprep.subr.bf16.mxu0 %v1708_v38 }
  0x5d   :  { %1711 = vmatpush3.bf16.msra.mxu0 %v1708_v38 }
  0x5e   :  { %1713 = vmatprep.subr.bf16.mxu0 %v1712_v44 }
  0x61   :  { %1715 = vmatpush3.bf16.msra.mxu0 %v1712_v44 }
  0x62   :  { %1836 = vmatprep.subr.bf16.mxu0 %v1883_v3 }
  0x64   :  { %1431 = vmatmul.mubr.msk.f32.vlgmr.msra.gmra.mrb[0].mxu0 %vm2151_vm4, %v120_v52  ;;  %v1744_v52 = vpack.c.bf16 %v1133_v50, %v1132_v49 }
  0x65   :  { %1433 = vmatprep.mubr.f32.mxu0 %v122_v54  ;;  %1838 = vmatpush3.bf16.msra.mxu0 %v1986_v24  ;;  %v470_v24 = vld [vmem:[%s2458_s7 + $0x30] sm:$0xff]  ;;  %v1135_v54 = vld [vmem:[%s2459_s4 + $0xa8] sm:$0xff] }
  0x66   :  { %1839 = vmatprep.subr.bf16.mxu0 %v1883_v3 }
  0x68   :  { %1434 = vmatmul.mubr.msk.f32.gmra.mrb[2].mxu0 %vm2160_vm5, %v127_v56  ;;  %v1748_v56 = vpack.c.bf16 %v1135_v54, %v1134_v53  ;;  %v637_v53 = vld [vmem:[%s2459_s4 + $0x28] sm:$0xff] }
  0x69   :  { %1841 = vmatpush3.bf16.msra.mxu0 %v1995_v27  ;;  %v471_v27 = vld [vmem:[%s2458_s7 + $0x38] sm:$0xff]  ;;  %1617 = vmatprep.mubr.msk.f32.mxu0 %vm1884_vm6, %v1885_v9  ;;  %v1772_v9 = vpack.c.bf16 %v633_v8, %v632_v7 }
  0x6a   :  { %1842 = vmatprep.subr.bf16.mxu0 %v1883_v3  ;;  %v1726_v60 = vpack.c.bf16 %v471_v27, %v470_v24  ;;  %v1138_v24 = vld [vmem:[%s2459_s4 + $0xc0] sm:$0xff]  ;;  %v1139_v27 = vld [vmem:[%s2459_s4 + $0xc8] sm:$0xff] }
  0x6c   :  { %1727 = vmatpush3.bf16.msra.mxu1 %v1726_v60 }
  0x6d   :  { %1844 = vmatpush3.bf16.msra.mxu0 %v1723_v59  ;;  %1728 = vmatprep.subr.bf16.mxu1 %v1883_v3  ;;  %v1752_v59 = vpack.c.bf16 %v1137_v58, %v1136_v57 }
  0x6e   :  { %1845 = vmatprep.subr.bf16.mxu0 %v1883_v3 }
  0x70   :  { %1730 = vmatpush3.bf16.msra.mxu1 %v1729_v63 }
  0x71   :  { %1847 = vmatpush3.bf16.msra.mxu0 %v1726_v60  ;;  %1731 = vmatprep.subr.bf16.mxu1 %v1883_v3  ;;  %v1756_v60 = vpack.c.bf16 %v1139_v27, %v1138_v24 }
  0x72   :  { %1848 = vmatprep.subr.bf16.mxu0 %v1883_v3 }
  0x74   :  { %1733 = vmatpush3.bf16.msra.mxu1 %v1732_v2 }
  0x75   :  { %1850 = vmatpush3.bf16.msra.mxu0 %v1729_v63  ;;  %1734 = vmatprep.subr.bf16.mxu1 %v1883_v3  ;;  %v1760_v63 = vpack.c.bf16 %v1141_v62, %v1140_v61 }
  0x76   :  { %1851 = vmatprep.subr.bf16.mxu0 %v1883_v3 }
  0x78   :  { %1736 = vmatpush3.bf16.msra.mxu1 %v1735_v6 }
  0x79   :  { %1853 = vmatpush3.bf16.msra.mxu0 %v1732_v2  ;;  %1737 = vmatprep.subr.bf16.mxu1 %v1883_v3  ;;  %v1764_v2 = vpack.c.bf16 %v1143_v1, %v1142_v0 }
  0x7a   :  { %1854 = vmatprep.subr.bf16.mxu0 %v1883_v3 }
  0x7c   :  { %1739 = vmatpush3.bf16.msra.mxu1 %v1738_v11 }
  0x7d   :  { %1856 = vmatpush3.bf16.msra.mxu0 %v1735_v6  ;;  %1741 = vmatprep.subr.bf16.mxu1 %v1740_v14  ;;  %v1768_v6 = vpack.c.bf16 %v1145_v5, %v1144_v4  ;;  %v638_v5 = vld [vmem:[%s2459_s4 + $0x30] sm:$0xff] }
  0x7e   :  { %1857 = vmatprep.subr.bf16.mxu0 %v1883_v3 }
  0x81   :  { %1859 = vmatpush3.bf16.msra.mxu0 %v1738_v11  ;;  %v559_v11 = vsub.s32 0, %v2012_v36 }
 0x137   :  { %v2223_v15 = vpop.f32.mrb[0].mxu0 }
 0x138   :  { %v451_v17 = vmul.f32 %v2223_v15, %v2223_v15  ;;  %v2227_v18 = vpop.f32.mrb[1].mxu0 }
 0x139   :  { %v441_v3 = vadd.f32 %v2223_v15, %v2227_v18  ;;  %v450_v19 = vmul.f32 %v2227_v18, %v2227_v18 }
 0x13b   :  { %v454_v20 = vadd.f32 %v451_v17, %v450_v19  ;;  %v2233_v21 = vpop.f32.mrb[2].mxu0 }
 0x13c   :  { %v2235_v22 = vpop.f32.mrb[3].mxu0  ;;  %v453_v26 = vmul.f32 %v2233_v21, %v2233_v21 }
 0x13d   :  { %v442_v23 = vadd.f32 %v441_v3, %v2235_v22  ;;  %v452_v25 = vmul.f32 %v2235_v22, %v2235_v22 }
 0x13f   :  { %v443_v28 = vadd.f32 %v2233_v21, %v442_v23  ;;  %v455_v29 = vadd.f32 %v454_v20, %v452_v25 }
 0x141   :  { %v444_v30 = vrot.slane %v443_v28, 4  ;;  %v456_v31 = vadd.f32 %v455_v29, %v453_v26  ;;  %v1128_v29 = vld [vmem:[%s2460_s2] ss:$0 sm:$0xff] }
 0x143   :  { %v445_v32 = vadd.f32 %v444_v30, %v443_v28  ;;  %v457_v33 = vrot.slane %v456_v31, 4  ;;  %v575_v30 = vsub.s32 1, %v2012_v36 }
 0x145   :  { %v446_v34 = vrot.slane %v445_v32, 2  ;;  %v458_v35 = vadd.f32 %v457_v33, %v456_v31 }
 0x147   :  { %v447_v37 = vadd.f32 %v446_v34, %v445_v32  ;;  %v459_v38 = vrot.slane %v458_v35, 2 }
 0x149   :  { %v448_v40 = vrot.slane %v447_v37, 1  ;;  %v460_v42 = vadd.f32 %v459_v38, %v458_v35 }
 0x14b   :  { %v461_v43 = vrot.slane %v460_v42, 1  ;;  %v449_v44 = vadd.f32 %v448_v40, %v447_v37  ;;  %v634_v40 = vld [vmem:[%s2459_s4 + $0x10] sm:$0xff] }
 0x14d   :  { %v462_v45 = vadd.f32 %v461_v43, %v460_v42  ;;  %v635_v42 = vld [vmem:[%s2459_s4 + $0x18] sm:$0xff] }
 0x14e   :  { %v1776_v50 = vpack.c.bf16 %v635_v42, %v634_v40  ;;  %v1158_v42 = vld [vmem:[%s2459_s4 + $0x150] sm:$0xff] }
 0x14f   :  { %v463_v47 = vsel %vm98_vm0, %v449_v44, %v462_v45 }
 0x150   :  { %1469 = vmatmul.mubr.f32.vlgmr.msra.gmra.mrb[0].mxu1 %v463_v47 }
 0x151   :  { %1743 = vmatpush3.bf16.msra.mxu1 %v1740_v14 }
 0x152   :  { %1745 = vmatprep.subr.bf16.mxu1 %v1744_v52 }
 0x155   :  { %1747 = vmatpush3.bf16.msra.mxu1 %v1744_v52  ;;  %v636_v52 = vld [vmem:[%s2459_s4 + $0x20] sm:$0xff] }
 0x156   :  { %1749 = vmatprep.subr.bf16.mxu1 %v1748_v56  ;;  %v1780_v61 = vpack.c.bf16 %v637_v53, %v636_v52  ;;  %v1162_v52 = vld [vmem:[%s2459_s4 + $0x170] sm:$0xff]  ;;  %v1163_v53 = vld [vmem:[%s2459_s4 + $0x178] sm:$0xff] }
 0x159   :  { %1751 = vmatpush3.bf16.msra.mxu1 %v1748_v56 }
 0x15a   :  { %1753 = vmatprep.subr.bf16.mxu1 %v1752_v59 }
 0x15d   :  { %1755 = vmatpush3.bf16.msra.mxu1 %v1752_v59 }
 0x15e   :  { %1757 = vmatprep.subr.bf16.mxu1 %v1756_v60 }
 0x161   :  { %1759 = vmatpush3.bf16.msra.mxu1 %v1756_v60 }
 0x162   :  { %1761 = vmatprep.subr.bf16.mxu1 %v1760_v63 }
 0x165   :  { %1763 = vmatpush3.bf16.msra.mxu1 %v1760_v63 }
 0x166   :  { %1765 = vmatprep.subr.bf16.mxu1 %v1764_v2 }
 0x169   :  { %1767 = vmatpush3.bf16.msra.mxu1 %v1764_v2 }
 0x16a   :  { %1769 = vmatprep.subr.bf16.mxu1 %v1768_v6 }
 0x16d   :  { %1771 = vmatpush3.bf16.msra.mxu1 %v1768_v6  ;;  %v639_v6 = vld [vmem:[%s2459_s4 + $0x38] sm:$0xff] }
 0x16e   :  { %1773 = vmatprep.subr.bf16.mxu1 %v1772_v9  ;;  %v1784_v8 = vpack.c.bf16 %v639_v6, %v638_v5 }
 0x223   :  { %v546_v12 = vpop.f32.mrb[0].mxu1 }
 0x224   :  { %v550_v13 = vmul.f32 %v546_v12, %v546_v12  ;;  %v560_v14 = vrot.slane %v546_v12, %v559_v11  ;;  %v1470_v17 = vpop.f32.mrb[1].mxu1 }
 0x226   :  { %v552_v3 = vrot.slane %v550_v13, 7  ;;  %v562_v19 = vsub.f32 %v2223_v15, %v560_v14  ;;  %v561_v20 = vsub.f32 %v2227_v18, %v560_v14  ;;  %v563_v23 = vsub.f32 %v2235_v22, %v560_v14  ;;  %v1129_v18 = vld [vmem:[%s2461_s3] ss:$0 sm:$0xff] }
 0x227   :  { %v564_v25 = vsub.f32 %v2233_v21, %v560_v14  ;;  %v642_v14 = vld [vmem:[%s2459_s4 + $0x50] sm:$0xff] }
 0x228   :  { %v554_v26 = vsub.f32 %v546_v12, %v552_v3  ;;  %v641_v12 = vld [vmem:[%s2459_s4 + $0x48] sm:$0xff]  ;;  %v1792_v17 = vpack.c.bf16 %v643_v48, %v642_v14  ;;  %v644_v3 = vld [vmem:[%s2459_s4 + $0x60] sm:$0xff] }
 0x22a   :  { %v555_v28 = vadd.f32 1e-05, %v554_v26 }
 0x22c   :  { %1879 = vrsqrt.f32 %v555_v28  ;;  %v1148_v28 = vld [vmem:[%s2459_s4 + $0x100] sm:$0xff] }
 0x236   :  { %v1880_v31 = vpop.eup %1879 }
 0x237   :  { %v572_v32 = vmul.f32 %v1880_v31, %v1128_v29  ;;  %v1149_v29 = vld [vmem:[%s2459_s4 + $0x108] sm:$0xff] }
 0x238   :  { %v1804_v31 = vpack.c.bf16 %v1149_v29, %v1148_v28 }
 0x239   :  { %v576_v15 = vrot.slane %v572_v32, %v575_v30  ;;  %v1150_v32 = vld [vmem:[%s2459_s4 + $0x110] sm:$0xff] }
 0x23b   :  { %v577_v22 = vmul.f32 %v576_v15, %v561_v20  ;;  %v578_v21 = vmul.f32 %v576_v15, %v562_v19  ;;  %v579_v33 = vmul.f32 %v576_v15, %v563_v23  ;;  %v580_v34 = vmul.f32 %v576_v15, %v564_v25  ;;  %v645_v19 = vld [vmem:[%s2459_s4 + $0x68] sm:$0xff]  ;;  %v646_v23 = vld [vmem:[%s2459_s4 + $0x70] sm:$0xff]  ;;  %v647_v25 = vld [vmem:[%s2459_s4 + $0x78] sm:$0xff] }
 0x23c   :  { %v1796_v20 = vpack.c.bf16 %v645_v19, %v644_v3  ;;  %v1800_v26 = vpack.c.bf16 %v647_v25, %v646_v23  ;;  %v1151_v15 = vld [vmem:[%s2459_s4 + $0x118] sm:$0xff] }
 0x23d   :  { %v588_v35 = vadd.f32 %v1129_v18, %v577_v22  ;;  %v589_v37 = vadd.f32 %v1129_v18, %v578_v21  ;;  %v590_v38 = vadd.f32 %v1129_v18, %v579_v33  ;;  %v591_v43 = vadd.f32 %v1129_v18, %v580_v34  ;;  %v1152_v22 = vld [vmem:[%s2459_s4 + $0x120] sm:$0xff]  ;;  %v1153_v21 = vld [vmem:[%s2459_s4 + $0x128] sm:$0xff]  ;;  %v1154_v34 = vld [vmem:[%s2459_s4 + $0x130] sm:$0xff] }
 0x23e   :  { %v1808_v18 = vpack.c.bf16 %v1151_v15, %v1150_v32  ;;  %v1812_v33 = vpack.c.bf16 %v1153_v21, %v1152_v22  ;;  %v1166_v22 = vld [vmem:[%s2462_s5] ss:$0 sm:$0xff] }
 0x23f   :  { %v592_v44 = vmax.f32 %v588_v35, 0.0  ;;  %v593_v45 = vmax.f32 %v589_v37, 0.0  ;;  %v594_v47 = vmax.f32 %v590_v38, 0.0  ;;  %v2314_v49 = vmax.f32 %v591_v43, 0.0  ;;  %v1155_v35 = vld [vmem:[%s2459_s4 + $0x138] sm:$0xff]  ;;  %v1157_v38 = vld [vmem:[%s2459_s4 + $0x148] sm:$0xff] }
 0x240   :  { %v1816_v37 = vpack.c.bf16 %v1155_v35, %v1154_v34  ;;  %v1820_v40 = vpack.c.bf16 %v1157_v38, %v1156_v16  ;;  %v1159_v43 = vld [vmem:[%s2459_s4 + $0x158] sm:$0xff] }
 0x241   :  { %1503 = vmatprep.mubr.f32.mxu1 %v592_v44  ;;  %v619_v54 = vrot.slane %v594_v47, 1  ;;  %v600_v56 = vrot.slane %v592_v44, 7  ;;  %v601_v57 = vrot.slane %v593_v45, 7  ;;  %v603_v58 = vrot.slane %v594_v47, 7 }
 0x242   :  { %1504 = vmatmul.mubr.f32.vlgmr.msra.gmra.mrb[2].mxu1 %v593_v45  ;;  %v605_v59 = vrot.slane %v2314_v49, 7  ;;  %v616_v24 = vrot.slane %v592_v44, 1  ;;  %v617_v27 = vrot.slane %v593_v45, 1  ;;  %v621_v60 = vrot.slane %v2314_v49, 1  ;;  %v1160_v45 = vld [vmem:[%s2459_s4 + $0x160] sm:$0xff] }
 0x243   :  { %1775 = vmatpush3.bf16.msra.mxu1 %v1772_v9  ;;  %1506 = vmatprep.mubr.f32.mxu1 %v594_v47  ;;  %v602_v62 = vsel %vm98_vm0, %v600_v56, %v601_v57  ;;  %v604_v63 = vsel %vm98_vm0, %v601_v57, %v603_v58  ;;  %v611_v7 = vsel %vm98_vm0, 0.0, %v600_v56  ;;  %v640_v9 = vld [vmem:[%s2459_s4 + $0x40] sm:$0xff]  ;;  %v1824_v44 = vpack.c.bf16 %v1159_v43, %v1158_v42  ;;  %v1161_v47 = vld [vmem:[%s2459_s4 + $0x168] sm:$0xff] }
 0x244   :  { %1777 = vmatprep.subr.bf16.mxu1 %v1776_v50  ;;  %v606_v0 = vsel %vm98_vm0, %v603_v58, %v605_v59  ;;  %v618_v1 = vsel %vm115_vm3, %v616_v24, %v617_v27  ;;  %v2329_v2 = vsel %vm115_vm3, %v617_v27, %v619_v54  ;;  %v2334_v4 = vsel %vm115_vm3, %v619_v54, %v621_v60 }
 0x245   :  { %v1788_v13 = vpack.c.bf16 %v641_v12, %v640_v9  ;;  %v1832_v54 = vpack.c.bf16 %v1163_v53, %v1162_v52  ;;  %v627_v56 = vsel %vm115_vm3, %v621_v60, 0.0 }
 0x246   :  { %1507 = vmatmul.mubr.f32.gmra.mrb[4].mxu1 %v2314_v49 }
 0x247   :  { %1779 = vmatpush3.bf16.msra.mxu1 %v1776_v50  ;;  %1541 = vmatprep.mubr.msk.f32.mxu1 %vm2045_vm1, %v611_v7  ;;  %v1828_v50 = vpack.c.bf16 %v1161_v47, %v1160_v45 }
 0x248   :  { %1781 = vmatprep.subr.bf16.mxu1 %v1780_v61 }
 0x24b   :  { %1783 = vmatpush3.bf16.msra.mxu1 %v1780_v61 }
 0x24c   :  { %1785 = vmatprep.subr.bf16.mxu1 %v1784_v8 }
 0x24f   :  { %1787 = vmatpush3.bf16.msra.mxu1 %v1784_v8 }
 0x250   :  { %1789 = vmatprep.subr.bf16.mxu1 %v1788_v13 }
 0x253   :  { %1791 = vmatpush3.bf16.msra.mxu1 %v1788_v13 }
 0x254   :  { %1793 = vmatprep.subr.bf16.mxu1 %v1792_v17 }
 0x257   :  { %1795 = vmatpush3.bf16.msra.mxu1 %v1792_v17 }
 0x258   :  { %1797 = vmatprep.subr.bf16.mxu1 %v1796_v20 }
 0x25b   :  { %1799 = vmatpush3.bf16.msra.mxu1 %v1796_v20 }
 0x25c   :  { %1801 = vmatprep.subr.bf16.mxu1 %v1800_v26 }
 0x25f   :  { %1803 = vmatpush3.bf16.msra.mxu1 %v1800_v26 }
 0x260   :  { %1805 = vmatprep.subr.bf16.mxu1 %v1804_v31 }
 0x262   :  { %1542 = vmatmul.mubr.f32.vlgmr.msra.gmra.mrb[2].mxu1 %v602_v62 }
 0x263   :  { %1544 = vmatprep.mubr.msk.f32.mxu1 %vm2101_vm2, %v604_v63  ;;  %1807 = vmatpush3.bf16.msra.mxu1 %v1804_v31 }
 0x264   :  { %1809 = vmatprep.subr.bf16.mxu1 %v1808_v18 }
 0x266   :  { %1545 = vmatmul.mubr.f32.gmra.mrb[4].mxu1 %v606_v0 }
 0x267   :  { %1811 = vmatpush3.bf16.msra.mxu1 %v1808_v18  ;;  %1579 = vmatprep.mubr.f32.mxu1 %v618_v1 }
 0x268   :  { %1813 = vmatprep.subr.bf16.mxu1 %v1812_v33 }
 0x26b   :  { %1815 = vmatpush3.bf16.msra.mxu1 %v1812_v33 }
 0x26c   :  { %1817 = vmatprep.subr.bf16.mxu1 %v1816_v37 }
 0x26f   :  { %1819 = vmatpush3.bf16.msra.mxu1 %v1816_v37 }
 0x270   :  { %1821 = vmatprep.subr.bf16.mxu1 %v1820_v40 }
 0x273   :  { %1823 = vmatpush3.bf16.msra.mxu1 %v1820_v40 }
 0x274   :  { %1825 = vmatprep.subr.bf16.mxu1 %v1824_v44 }
 0x277   :  { %1827 = vmatpush3.bf16.msra.mxu1 %v1824_v44 }
 0x278   :  { %1829 = vmatprep.subr.bf16.mxu1 %v1828_v50 }
 0x27b   :  { %1831 = vmatpush3.bf16.msra.mxu1 %v1828_v50 }
 0x27c   :  { %1833 = vmatprep.subr.bf16.mxu1 %v1832_v54 }
 0x27f   :  { %1835 = vmatpush3.bf16.msra.mxu1 %v1832_v54 }
 0x282   :  { %1580 = vmatmul.mubr.msk.f32.vlgmr.msra.gmra.mrb[2].mxu1 %vm2151_vm4, %v2329_v2 }
 0x283   :  { %1582 = vmatprep.mubr.f32.mxu1 %v2334_v4 }
 0x286   :  { %1583 = vmatmul.mubr.msk.f32.gmra.mrb[4].mxu1 %vm2160_vm5, %v627_v56 }
 0x355   :  { %v1581_v57 = vpop.f32.mrb[2].mxu1 }
 0x356   :  { %v951_v58 = vmul.f32 %v1581_v57, %v1581_v57  ;;  %v918_v59 = vpop.f32.mrb[3].mxu1 }
 0x357   :  { %v941_v24 = vadd.f32 %v1581_v57, %v918_v59  ;;  %v950_v27 = vmul.f32 %v918_v59, %v918_v59 }
 0x359   :  { %v954_v61 = vadd.f32 %v951_v58, %v950_v27  ;;  %v1584_v62 = vpop.f32.mrb[4].mxu1 }
 0x35a   :  { %v928_v63 = vpop.f32.mrb[5].mxu1  ;;  %v953_v1 = vmul.f32 %v1584_v62, %v1584_v62 }
 0x35b   :  { %v942_v0 = vadd.f32 %v941_v24, %v928_v63  ;;  %v952_v51 = vmul.f32 %v928_v63, %v928_v63 }
 0x35d   :  { %v943_v2 = vadd.f32 %v1584_v62, %v942_v0  ;;  %v955_v4 = vadd.f32 %v954_v61, %v952_v51 }
 0x35f   :  { %v944_v5 = vrot.slane %v943_v2, 4  ;;  %v956_v49 = vadd.f32 %v955_v4, %v953_v1 }
 0x361   :  { %v945_v6 = vadd.f32 %v944_v5, %v943_v2  ;;  %v957_v60 = vrot.slane %v956_v49, 4 }
 0x363   :  { %v946_v7 = vrot.slane %v945_v6, 2  ;;  %v958_v55 = vadd.f32 %v957_v60, %v956_v49 }
 0x365   :  { %v947_v8 = vadd.f32 %v946_v7, %v945_v6  ;;  %v959_v9 = vrot.slane %v958_v55, 2 }
 0x367   :  { %v948_v12 = vrot.slane %v947_v8, 1  ;;  %v960_v13 = vadd.f32 %v959_v9, %v958_v55 }
 0x369   :  { %v961_v14 = vrot.slane %v960_v13, 1  ;;  %v949_v48 = vadd.f32 %v948_v12, %v947_v8 }
 0x36b   :  { %v962_v17 = vadd.f32 %v961_v14, %v960_v13 }
 0x36d   :  { %v963_v3 = vsel %vm98_vm0, %v949_v48, %v962_v17 }
 0x36e   :  { %1618 = vmatmul.mubr.f32.vlgmr.msra.gmra.mrb[4].mxu0 %v963_v3 }
 0x441   :  { %v1030_v19 = vpop.f32.mrb[4].mxu0 }
 0x442   :  { %v1034_v20 = vmul.f32 %v1030_v19, %v1030_v19  ;;  %v1044_v23 = vrot.slane %v1030_v19, %v559_v11  ;;  %v1619_v25 = vpop.f32.mrb[5].mxu0  ;;  %v1167_v11 = vld [vmem:[%s2463_s6] ss:$0 sm:$0xff] }
 0x444   :  { %v1036_v26 = vrot.slane %v1034_v20, 7  ;;  %v1045_v28 = vsub.f32 %v918_v59, %v1044_v23  ;;  %v1046_v29 = vsub.f32 %v1581_v57, %v1044_v23  ;;  %v1047_v31 = vsub.f32 %v928_v63, %v1044_v23 }
 0x445   :  { %v1048_v32 = vsub.f32 %v1584_v62, %v1044_v23 }
 0x446   :  { %v1038_v15 = vsub.f32 %v1030_v19, %v1036_v26 }
 0x448   :  { %v1039_v18 = vadd.f32 1e-05, %v1038_v15 }
 0x44a   :  { %1881 = vrsqrt.f32 %v1039_v18 }
 0x454   :  { %v1882_v21 = vpop.eup %1881 }
 0x455   :  { %v1056_v33 = vmul.f32 %v1882_v21, %v1166_v22 }
 0x457   :  { %v1060_v34 = vrot.slane %v1056_v33, %v575_v30 }
 0x459   :  { %v1061_v35 = vmul.f32 %v1060_v34, %v1045_v28  ;;  %v1062_v37 = vmul.f32 %v1060_v34, %v1046_v29  ;;  %v1063_v16 = vmul.f32 %v1060_v34, %v1047_v31  ;;  %v1064_v38 = vmul.f32 %v1060_v34, %v1048_v32 }
 0x45b   :  { %v1072_v40 = vadd.f32 %v1167_v11, %v1061_v35  ;;  %v1073_v42 = vadd.f32 %v1167_v11, %v1062_v37  ;;  %v1074_v43 = vadd.f32 %v1167_v11, %v1063_v16  ;;  %v1075_v44 = vadd.f32 %v1167_v11, %v1064_v38 }
 0x45d   :  { %v1076_v45 = vadd.f32 %v1072_v40, %v1953_v10  ;;  %v1077_v47 = vadd.f32 %v1073_v42, %v2023_v39  ;;  %v1078_v50 = vadd.f32 %v1074_v43, %v2028_v41  ;;  %v1079_v36 = vadd.f32 %v1075_v44, %v2043_v46 }
 0x45f   :  { %v1080_v30 = vmax.f32 %v1076_v45, 0.0  ;;  %v1081_v52 = vmax.f32 %v1077_v47, 0.0  ;;  %v1082_v53 = vmax.f32 %v1078_v50, 0.0  ;;  %v1083_v54 = vmax.f32 %v1079_v36, 0.0 }
 0x461   :  { %1084 = vst [vmem:[%s2464_s8] sm:$0xff] %v1080_v30  ;;  %1085 = vst [vmem:[%s2464_s8 + $0x8] sm:$0xff] %v1081_v52 }
 0x462   :  { %1086 = vst [vmem:[%s2464_s8 + $0x10] sm:$0xff] %v1082_v53  ;;  %1087 = vst [vmem:[%s2464_s8 + $0x18] sm:$0xff] %v1083_v54 }

</bundles_post_ra>
